<compile_context>
chip_gen: v7x
topology: tpu7x:2x2x1
jax: 0.10.0
libtpu: 0.0.40
codegen_flags: <defaults>
</compile_context>

<pallas_src>
import functools

import jax
import jax.numpy as jnp
from jax.experimental import pallas as pl
from jax.experimental.pallas import tpu as pltpu

_IGNORE_INDEX = -100  # PyTorch F.cross_entropy default


def _round_up(x, m):
    return ((x + m - 1) // m) * m


def _ce_kernel(logits_ref, labels_ref, sum_ref, cnt_ref,
               m_ref, s_ref, ll_ref, *, n_tokens, vocab, tile_n, tile_v):
    """One (token-tile, vocab-tile) grid step of online-logsumexp cross entropy.

    logits_ref: (tile_n, tile_v) native-dtype logits (batch dim squeezed).
    labels_ref: (tile_n, 1) int32 labels for this token tile (resident across V).
    sum_ref / cnt_ref: (1, 1) f32 per-token-tile partial loss sum / valid count.
    m_ref / s_ref / ll_ref: (tile_n, 1) f32 running max / exp-sum / label logit.
    """
    i = pl.program_id(0)
    j = pl.program_id(1)

    @pl.when(j == 0)
    def _init():
        m_ref[...] = jnp.full_like(m_ref, -jnp.inf)
        s_ref[...] = jnp.zeros_like(s_ref)
        ll_ref[...] = jnp.zeros_like(ll_ref)

    logits = logits_ref[...].astype(jnp.float32)        # upcast in-kernel (keep HBM narrow)
    labels = labels_ref[...]                            # (tile_n, 1) int32

    col = jax.lax.broadcasted_iota(jnp.int32, (tile_n, tile_v), 1) + j * tile_v
    masked = jnp.where(col < vocab, logits, -jnp.inf)   # mask vocab remainder

    # online logsumexp update (single streaming pass over logits)
    m_old = m_ref[...]
    m_new = jnp.maximum(m_old, jnp.max(masked, axis=-1, keepdims=True))
    s_ref[...] = (s_ref[...] * jnp.exp(m_old - m_new)
                  + jnp.sum(jnp.exp(masked - m_new), axis=-1, keepdims=True))
    m_ref[...] = m_new

    # label-logit gather folded into the same pass (select, no one-hot multiply)
    ll_ref[...] += jnp.sum(jnp.where(col == labels, logits, 0.0),
                           axis=-1, keepdims=True)

    @pl.when(j == pl.num_programs(1) - 1)
    def _finalize():
        row = jax.lax.broadcasted_iota(jnp.int32, (tile_n, 1), 0) + i * tile_n
        valid = (row < n_tokens) & (labels != _IGNORE_INDEX)
        per_token = m_ref[...] + jnp.log(s_ref[...]) - ll_ref[...]
        sum_ref[...] = jnp.sum(jnp.where(valid, per_token, 0.0),
                               axis=(0, 1), keepdims=True)
        cnt_ref[...] = jnp.sum(valid.astype(jnp.float32),
                               axis=(0, 1), keepdims=True)


def lamda_loss(x_input, x_labels, *, tile_n=256, tile_v=4096):
    """JAX/Pallas equivalent of LaMDA_Loss.forward.

    x_input: (B, S, V) logits (B must be 1, as x_labels[:1] implies in the module).
    x_labels: (*, S-1) int class indices; only the first row is used.
    """
    B, S, V = x_input.shape
    labels = x_labels[:1]
    n_tokens = S - 1
    if B != 1 or labels.shape != (1, n_tokens):
        # F.cross_entropy would raise on the same mismatch
        raise ValueError("x_input batch must be 1 and x_labels[:1] must be (1, S-1)")

    tile_n = min(tile_n, _round_up(n_tokens, 8))
    tile_v = min(tile_v, _round_up(V, 128))
    num_n = pl.cdiv(n_tokens, tile_n)
    num_v = pl.cdiv(V, tile_v)

    # Labels are tiny: pad/reshape them in plain JAX.  The big logits tensor is
    # passed through untouched -- the ':-1' slice lives in the grid extent plus
    # remainder masking, so no extra HBM copy of the logits is materialized.
    labels_padded = jnp.full((num_n * tile_n, 1), _IGNORE_INDEX, dtype=jnp.int32)
    labels_padded = labels_padded.at[:n_tokens, 0].set(labels[0].astype(jnp.int32))

    kernel = functools.partial(_ce_kernel, n_tokens=n_tokens, vocab=V,
                               tile_n=tile_n, tile_v=tile_v)

    grid_spec = pltpu.PrefetchScalarGridSpec(
        num_scalar_prefetch=0,
        grid=(num_n, num_v),
        in_specs=[
            # stream (tile_n, tile_v) logit tiles; batch dim squeezed in-kernel
            pl.BlockSpec((pl.Squeezed(), tile_n, tile_v), lambda i, j: (0, i, j)),
            # per-token-tile labels, resident across the whole vocab sweep
            pl.BlockSpec((tile_n, 1), lambda i, j: (i, 0)),
        ],
        out_specs=(
            pl.BlockSpec((1, 1), lambda i, j: (i, 0)),   # partial loss sums
            pl.BlockSpec((1, 1), lambda i, j: (i, 0)),   # valid-token counts
        ),
        scratch_shapes=[
            pltpu.VMEM((tile_n, 1), jnp.float32),   # running max
            pltpu.VMEM((tile_n, 1), jnp.float32),   # running exp-sum
            pltpu.VMEM((tile_n, 1), jnp.float32),   # label logit
        ],
    )

    itemsize = x_input.dtype.itemsize
    cost = pl.CostEstimate(
        flops=6 * n_tokens * V,
        transcendentals=n_tokens * V,
        bytes_accessed=n_tokens * V * itemsize + labels_padded.size * 4 + num_n * 8,
    )

    part_sum, part_cnt = pl.pallas_call(
        kernel,
        grid_spec=grid_spec,
        out_shape=(
            jax.ShapeDtypeStruct((num_n, 1), jnp.float32),
            jax.ShapeDtypeStruct((num_n, 1), jnp.float32),
        ),
        compiler_params=pltpu.CompilerParams(
            # token tiles independent -> megacore-shardable on v7x;
            # vocab sweep carries online-logsumexp state -> arbitrary.
            dimension_semantics=("parallel", "arbitrary"),
            vmem_limit_bytes=32 * 1024 * 1024,
        ),
        cost_estimate=cost,
    )(x_input, labels_padded)

    # single division, in the wrapper: mean over non-ignored tokens
    return jnp.sum(part_sum) / jnp.sum(part_cnt)


def _reference_loss(x_input, x_labels):
    x_inp = x_input[:, :-1, :].astype(jnp.float32)
    labels = x_labels[:1]
    lse = jax.scipy.special.logsumexp(x_inp, axis=-1)                  # (B, S-1)
    label_logit = jnp.take_along_axis(x_inp, labels[..., None], axis=-1)[..., 0]
    return jnp.mean(lse - label_logit)


if __name__ == "__main__":
    key = jax.random.PRNGKey(0)
    k1, k2 = jax.random.split(key)

    # small but multi-vocab-tile shape: 8 next-token positions, 3 vocab tiles of 128
    B, S, V = 1, 9, 384
    x_input = jax.random.normal(k1, (B, S, V), dtype=jnp.float32)
    x_labels = jax.random.randint(k2, (4, S - 1), 0, V, dtype=jnp.int32)

    loss = lamda_loss(x_input, x_labels, tile_n=8, tile_v=128)
    jax.block_until_ready(loss)

    ref = _reference_loss(x_input, x_labels)
    if not jnp.allclose(loss, ref, atol=1e-5, rtol=1e-5):
        raise AssertionError(f"mismatch: pallas={loss} ref={ref}")

    print("KERNEL_OK")
</pallas_src>

<mosaic_0001>
module attributes {stable_mosaic.version = 11 : i64} {
  func.func @_ce_kernel(%arg0: i32, %arg1: i32, %arg2: memref<1x8x128xf32, #tpu.memory_space<vmem>>, %arg3: memref<8x1xi32, #tpu.memory_space<vmem>>, %arg4: memref<1x1xf32, #tpu.memory_space<vmem>>, %arg5: memref<1x1xf32, #tpu.memory_space<vmem>>, %arg6: memref<8x1xf32, #tpu.memory_space<vmem>>, %arg7: memref<8x1xf32, #tpu.memory_space<vmem>>, %arg8: memref<8x1xf32, #tpu.memory_space<vmem>>) attributes {dimension_semantics = [#tpu.dimension_semantics<parallel>, #tpu.dimension_semantics<arbitrary>], iteration_bounds = array<i64: 1, 3>, scalar_prefetch = 0 : i64, scratch_operands = 3 : i64, tpu.core_type = #tpu.core_type<tc>, window_params = [{transform_indices = @transform_0, window_bounds = array<i64: 1, 8, 128>}, {transform_indices = @transform_1, window_bounds = array<i64: 8, 1>}, {transform_indices = @transform_2, window_bounds = array<i64: 1, 1>}, {transform_indices = @transform_3, window_bounds = array<i64: 1, 1>}]} {
    %c0_i32 = arith.constant 0 : i32
    %0 = arith.cmpi eq, %arg1, %c0_i32 : i32
    %1 = arith.extui %0 : i1 to i32
    %c0_i32_0 = arith.constant 0 : i32
    %2 = arith.cmpi ne, %1, %c0_i32_0 : i32
    scf.if %2 {
      %cst_22 = arith.constant 0xFF800000 : f32
      %42 = vector.broadcast %cst_22 : f32 to vector<8x1xf32>
      %c0_23 = arith.constant 0 : index
      %c0_24 = arith.constant 0 : index
      %43 = vector.load %arg6[%c0_23, %c0_24] : memref<8x1xf32, #tpu.memory_space<vmem>>, vector<8x1xf32>
      tpu.vector_store %arg6[%c0_23, %c0_24], %42 {strides = array<i32>} : memref<8x1xf32, #tpu.memory_space<vmem>>, vector<8x1xf32>,
      %cst_25 = arith.constant 0.000000e+00 : f32
      %44 = vector.broadcast %cst_25 : f32 to vector<8x1xf32>
      %c0_26 = arith.constant 0 : index
      %c0_27 = arith.constant 0 : index
      %45 = vector.load %arg7[%c0_26, %c0_27] : memref<8x1xf32, #tpu.memory_space<vmem>>, vector<8x1xf32>
      tpu.vector_store %arg7[%c0_26, %c0_27], %44 {strides = array<i32>} : memref<8x1xf32, #tpu.memory_space<vmem>>, vector<8x1xf32>,
      %cst_28 = arith.constant 0.000000e+00 : f32
      %46 = vector.broadcast %cst_28 : f32 to vector<8x1xf32>
      %c0_29 = arith.constant 0 : index
      %c0_30 = arith.constant 0 : index
      %47 = vector.load %arg8[%c0_29, %c0_30] : memref<8x1xf32, #tpu.memory_space<vmem>>, vector<8x1xf32>
      tpu.vector_store %arg8[%c0_29, %c0_30], %46 {strides = array<i32>} : memref<8x1xf32, #tpu.memory_space<vmem>>, vector<8x1xf32>,
    } else {
    }
    %c0 = arith.constant 0 : index
    %c0_1 = arith.constant 0 : index
    %c0_2 = arith.constant 0 : index
    %3 = vector.load %arg2[%c0, %c0_1, %c0_2] : memref<1x8x128xf32, #tpu.memory_space<vmem>>, vector<1x8x128xf32>
    %4 = vector.shape_cast %3 : vector<1x8x128xf32> to vector<8x128xf32>
    %c0_3 = arith.constant 0 : index
    %c0_4 = arith.constant 0 : index
    %5 = vector.load %arg3[%c0_3, %c0_4] : memref<8x1xi32, #tpu.memory_space<vmem>>, vector<8x1xi32>
    %6 = tpu.iota {dimensions = array<i32: 1>} : vector<8x128xi32>
    %c128_i32 = arith.constant 128 : i32
    %7 = arith.muli %arg1, %c128_i32 : i32
    %8 = vector.broadcast %7 : i32 to vector<8x128xi32>
    %9 = arith.addi %6, %8 : vector<8x128xi32>
    %c384_i32 = arith.constant 384 : i32
    %10 = vector.broadcast %c384_i32 : i32 to vector<8x128xi32>
    %11 = arith.cmpi slt, %9, %10 : vector<8x128xi32>
    %cst = arith.constant 0xFF800000 : f32
    %12 = vector.broadcast %cst : f32 to vector<8x128xf32>
    %13 = arith.select %11, %4, %12 : vector<8x128xi1>, vector<8x128xf32>
    %c0_5 = arith.constant 0 : index
    %c0_6 = arith.constant 0 : index
    %14 = vector.load %arg6[%c0_5, %c0_6] : memref<8x1xf32, #tpu.memory_space<vmem>>, vector<8x1xf32>
    %cst_7 = arith.constant dense<0xFF800000> : vector<8xf32>
    %15 = vector.multi_reduction <maximumf>, %13, %cst_7 [1] : vector<8x128xf32> to vector<8xf32>
    %16 = vector.shape_cast %15 : vector<8xf32> to vector<8x1xf32>
    %17 = arith.maximumf %14, %16 : vector<8x1xf32>
    %c0_8 = arith.constant 0 : index
    %c0_9 = arith.constant 0 : index
    %18 = vector.load %arg7[%c0_8, %c0_9] : memref<8x1xf32, #tpu.memory_space<vmem>>, vector<8x1xf32>
    %19 = arith.subf %14, %17 : vector<8x1xf32>
    %20 = math.exp %19 : vector<8x1xf32>
    %21 = arith.mulf %18, %20 : vector<8x1xf32>
    %22 = vector.broadcast %17 : vector<8x1xf32> to vector<8x128xf32>
    %23 = arith.subf %13, %22 : vector<8x128xf32>
    %24 = math.exp %23 : vector<8x128xf32>
    %cst_10 = arith.constant dense<0.000000e+00> : vector<8xf32>
    %25 = vector.multi_reduction <add>, %24, %cst_10 [1] : vector<8x128xf32> to vector<8xf32>
    %26 = vector.shape_cast %25 : vector<8xf32> to vector<8x1xf32>
    %27 = arith.addf %21, %26 : vector<8x1xf32>
    %c0_11 = arith.constant 0 : index
    %c0_12 = arith.constant 0 : index
    %28 = vector.load %arg7[%c0_11, %c0_12] : memref<8x1xf32, #tpu.memory_space<vmem>>, vector<8x1xf32>
    tpu.vector_store %arg7[%c0_11, %c0_12], %27 {strides = array<i32>} : memref<8x1xf32, #tpu.memory_space<vmem>>, vector<8x1xf32>,
    %c0_13 = arith.constant 0 : index
    %c0_14 = arith.constant 0 : index
    %29 = vector.load %arg6[%c0_13, %c0_14] : memref<8x1xf32, #tpu.memory_space<vmem>>, vector<8x1xf32>
    tpu.vector_store %arg6[%c0_13, %c0_14], %17 {strides = array<i32>} : memref<8x1xf32, #tpu.memory_space<vmem>>, vector<8x1xf32>,
    %c0_15 = arith.constant 0 : index
    %c0_16 = arith.constant 0 : index
    %30 = vector.load %arg8[%c0_15, %c0_16] : memref<8x1xf32, #tpu.memory_space<vmem>>, vector<8x1xf32>
    %31 = vector.broadcast %5 : vector<8x1xi32> to vector<8x128xi32>
    %32 = arith.cmpi eq, %9, %31 : vector<8x128xi32>
    %cst_17 = arith.constant 0.000000e+00 : f32
    %33 = vector.broadcast %cst_17 : f32 to vector<8x128xf32>
    %34 = arith.select %32, %4, %33 : vector<8x128xi1>, vector<8x128xf32>
    %cst_18 = arith.constant dense<0.000000e+00> : vector<8xf32>
    %35 = vector.multi_reduction <add>, %34, %cst_18 [1] : vector<8x128xf32> to vector<8xf32>
    %36 = vector.shape_cast %35 : vector<8xf32> to vector<8x1xf32>
    %37 = arith.addf %30, %36 : vector<8x1xf32>
    %c0_19 = arith.constant 0 : index
    %c0_20 = arith.constant 0 : index
    %38 = vector.load %arg8[%c0_19, %c0_20] : memref<8x1xf32, #tpu.memory_space<vmem>>, vector<8x1xf32>
    tpu.vector_store %arg8[%c0_19, %c0_20], %37 {strides = array<i32>} : memref<8x1xf32, #tpu.memory_space<vmem>>, vector<8x1xf32>,
    %c2_i32 = arith.constant 2 : i32
    %39 = arith.cmpi eq, %arg1, %c2_i32 : i32
    %40 = arith.extui %39 : i1 to i32
    %c0_i32_21 = arith.constant 0 : i32
    %41 = arith.cmpi ne, %40, %c0_i32_21 : i32
    scf.if %41 {
      %42 = tpu.iota {dimensions = array<i32: 0>} : vector<8x1xi32>
      %c8_i32 = arith.constant 8 : i32
      %43 = arith.muli %arg0, %c8_i32 : i32
      %44 = vector.broadcast %43 : i32 to vector<8x1xi32>
      %45 = arith.addi %42, %44 : vector<8x1xi32>
      %c8_i32_22 = arith.constant 8 : i32
      %46 = vector.broadcast %c8_i32_22 : i32 to vector<8x1xi32>
      %47 = arith.cmpi slt, %45, %46 : vector<8x1xi32>
      %c-100_i32 = arith.constant -100 : i32
      %48 = vector.broadcast %c-100_i32 : i32 to vector<8x1xi32>
      %49 = arith.cmpi ne, %5, %48 : vector<8x1xi32>
      %50 = arith.andi %47, %49 : vector<8x1xi1>
      %c0_23 = arith.constant 0 : index
      %c0_24 = arith.constant 0 : index
      %51 = vector.load %arg6[%c0_23, %c0_24] : memref<8x1xf32, #tpu.memory_space<vmem>>, vector<8x1xf32>
      %c0_25 = arith.constant 0 : index
      %c0_26 = arith.constant 0 : index
      %52 = vector.load %arg7[%c0_25, %c0_26] : memref<8x1xf32, #tpu.memory_space<vmem>>, vector<8x1xf32>
      %53 = math.log %52 : vector<8x1xf32>
      %54 = arith.addf %51, %53 : vector<8x1xf32>
      %c0_27 = arith.constant 0 : index
      %c0_28 = arith.constant 0 : index
      %55 = vector.load %arg8[%c0_27, %c0_28] : memref<8x1xf32, #tpu.memory_space<vmem>>, vector<8x1xf32>
      %56 = arith.subf %54, %55 : vector<8x1xf32>
      %cst_29 = arith.constant 0.000000e+00 : f32
      %57 = vector.broadcast %cst_29 : f32 to vector<8x1xf32>
      %58 = arith.select %50, %56, %57 : vector<8x1xi1>, vector<8x1xf32>
      %59 = vector.shape_cast %58 : vector<8x1xf32> to vector<1x8x1xf32>
      %cst_30 = arith.constant dense<0.000000e+00> : vector<1xf32>
      %60 = vector.multi_reduction <add>, %59, %cst_30 [1, 2] : vector<1x8x1xf32> to vector<1xf32>
      %61 = vector.shape_cast %60 : vector<1xf32> to vector<1x1x1xf32>
      %62 = vector.extract %61[0, 0, 0] : f32 from vector<1x1x1xf32>
      %63 = vector.broadcast %62 : f32 to vector<1x1xf32>
      %c0_31 = arith.constant 0 : index
      %c0_32 = arith.constant 0 : index
      %64 = vector.load %arg4[%c0_31, %c0_32] : memref<1x1xf32, #tpu.memory_space<vmem>>, vector<1x1xf32>
      tpu.vector_store %arg4[%c0_31, %c0_32], %63 {strides = array<i32>} : memref<1x1xf32, #tpu.memory_space<vmem>>, vector<1x1xf32>,
      %65 = arith.extui %50 : vector<8x1xi1> to vector<8x1xi32>
      %66 = arith.sitofp %65 : vector<8x1xi32> to vector<8x1xf32>
      %67 = vector.shape_cast %66 : vector<8x1xf32> to vector<1x8x1xf32>
      %cst_33 = arith.constant dense<0.000000e+00> : vector<1xf32>
      %68 = vector.multi_reduction <add>, %67, %cst_33 [1, 2] : vector<1x8x1xf32> to vector<1xf32>
      %69 = vector.shape_cast %68 : vector<1xf32> to vector<1x1x1xf32>
      %70 = vector.extract %69[0, 0, 0] : f32 from vector<1x1x1xf32>
      %71 = vector.broadcast %70 : f32 to vector<1x1xf32>
      %c0_34 = arith.constant 0 : index
      %c0_35 = arith.constant 0 : index
      %72 = vector.load %arg5[%c0_34, %c0_35] : memref<1x1xf32, #tpu.memory_space<vmem>>, vector<1x1xf32>
      tpu.vector_store %arg5[%c0_34, %c0_35], %71 {strides = array<i32>} : memref<1x1xf32, #tpu.memory_space<vmem>>, vector<1x1xf32>,
    } else {
    }
    return
  }
  func.func @transform_0(%arg0: i32, %arg1: i32) -> (i32, i32, i32) {
    %c0_i32 = arith.constant 0 : i32
    %c0_i32_0 = arith.constant 0 : i32
    return %c0_i32, %arg0, %arg1 : i32, i32, i32
  }
  func.func @transform_1(%arg0: i32, %arg1: i32) -> (i32, i32) {
    %c0_i32 = arith.constant 0 : i32
    %c0_i32_0 = arith.constant 0 : i32
    return %arg0, %c0_i32 : i32, i32
  }
  func.func @transform_2(%arg0: i32, %arg1: i32) -> (i32, i32) {
    %c0_i32 = arith.constant 0 : i32
    %c0_i32_0 = arith.constant 0 : i32
    return %arg0, %c0_i32 : i32, i32
  }
  func.func @transform_3(%arg0: i32, %arg1: i32) -> (i32, i32) {
    %c0_i32 = arith.constant 0 : i32
    %c0_i32_0 = arith.constant 0 : i32
    return %arg0, %c0_i32 : i32, i32
  }
}

</mosaic_0001>

<bundles_post_ra>
// kernel: tpu_custom_call.1
= control target key start
LH: loop header
LB: loop body
LE: loop exit
PB: predicated region body
PF: predicated region fallthrough
CT: control target
= control target key end

     0   :  { %9 = vsyncpa [#allocation6], 0  ;;  %s693_s0 = inlined_call_operand.vmem [shape: f32[1,9,384], index: 0, kind: input, shape index: {}]   ;;  %s694_s1 = inlined_call_operand.vmem [shape: s32[8,1], index: 1, kind: input, shape index: {}]   ;;  %s695_s2 = inlined_call_operand.hbm [shape: f32[1,1], index: 2, kind: output, shape index: {0}]   ;;  %s696_s3 = inlined_call_operand.hbm [shape: f32[1,1], index: 3, kind: output, shape index: {1}]  }
   0x1   :  { %10 = vsyncpa [#allocation8], 0  ;;  %s589_s12 = smov 0   ;;  %s591_s13 = smov 0  }
   0x2   :  { %s593_s14 = smov 0  }
   0x3 LB: > { %s409_s15 = sadd.s32 4294967295, %s561_s14   ;;  %s25_s16 = sadd.s32 1, %s557_s13  ;;  %s561_s14 = sphi %s593_s14, %s16_s14   ;;  %s557_s13 = sphi %s591_s13, %s699_s13   ;;  %s553_s12 = sphi %s589_s12, %s698_s12  }
   0x4   : > { %p26_p0 = scmp.ge.s32.totalorder %s25_s16, 3  ;;  %p413_p1 = scmp.ge.s32.totalorder %s561_s14, 1 }
   0x5   : > { %p168_p2 = scmp.lt.s32.totalorder %s561_s14, 4 }
   0x6   : > { %s701_s16 = smov (%p26_p0, %s25_s16), 0 }
   0x7   : > { %p169_p3 = pnand %p413_p1, %p168_p2 }
   0x8   : > { %p196_p4 = scmp.lt.s32.totalorder (!%p169_p3), %s553_s12, 2  ;;  %p415_p5 = scmp.ne.s32.totalorder (!%p169_p3), %s553_s12, 0 }
   0x9   : > { %172 = sbr.rel (%p169_p3) target bundleno = 748 (0x2ec), region = 28 }
  0x10   : > { %s197_s17 = scalar_select %p196_p4, %s553_s12, 2 }
  0x11   : > { %209 = sbr.rel (%p415_p5) target bundleno = 24 (0x18), region = 32  ;;  %vm210_vm0 = vcmask (!%p415_p5), 7168   ;;  %v563_v0 = vmov (!%p415_p5), -inf   ;;  %v564_v1 = vmov (!%p415_p5), 0.0  }
  0x12   : > { %s414_s18 = sshll.u32 %s197_s17, 3  ;;  %211 = vst.msk [vmem:[#allocation2] sm:$0xff] (!%p415_p5), %vm210_vm0, %v563_v0  ;;  %212 = vst.msk [vmem:[#allocation3] sm:$0xff] (!%p415_p5), %vm210_vm0, %v564_v1 }
  0x13   : > { %s201_s21 = scalar_lea.vmem %s693_s0, %s414_s18  ;;  %213 = vst.msk [vmem:[#allocation4] sm:$0xff] (!%p415_p5), %vm210_vm0, %v564_v1 }
  0x18 PF: > { %v216_v2 = vlaneseq  ;;  %s416_s22 = sshll.u32 %s553_s12, 7  ;;  %v214_v5 = vld [vmem:[%s201_s21] sm:$0xff]  ;;  %v565_v8 = vmov 0   ;;  %vm243_vm2 = vcmask 7168   ;;  %p417_p6 = scmp.ne.s32.totalorder %s553_s12, 2 }
  0x19   : > { %v219_v3 = vstv %s416_s22  ;;  %471 = vset.pattern.permute.xlu0 %v565_v8  ;;  %472 = vset.pattern.permute.xlu1 %v565_v8  ;;  %v215_v9 = vld [vmem:[%s694_s1] sm:$0xff]  ;;  %v227_v22 = vld [vmem:[#allocation3] sm:$0xff]  ;;  %v566_v37 = vmov (!%p417_p6), 0.0   ;;  %vm287_vm5 = vcmask (!%p417_p6), 0  }
  0x1a   : > { %v217_v4 = vand.u32 127, %v216_v2  ;;  %248 = vperm.xlu1 %472, %v215_v9   ;;  %v223_v10 = vld [vmem:[#allocation2] sm:$0xff]  ;;  %v246_v26 = vld [vmem:[#allocation4] sm:$0xff]  ;;  %vm266_vm4 = vcmp.ne.s32.totalorder (!%p417_p6), %v215_v9, 4294967196 }
  0x1b   : > { %v418_v38 = vsel (!%p417_p6), %vm266_vm4, 1.0, %v566_v37 }
  0x1c   : > { %v220_v6 = vadd.s32 %v219_v3, %v217_v4  ;;  %v291_v40 = vsel (!%p417_p6), %vm243_vm2, %v418_v38, 0.0 }
  0x1e   : > { %vm221_vm1 = vcmp.lt.s32.totalorder %v220_v6, 384 }
  0x1f   : > { %v222_v7 = vsel %vm221_vm1, %v214_v5, -inf }
  0x20   : > { %224 = vmax.xlane.f32.xlu0 %v222_v7 }
  0x99   : > { %v249_v17 = vpop.permute.xlu1 %248 }
  0x9a   : > { %vm250_vm3 = vcmp.eq.s32.totalorder %v220_v6, %v249_v17 }
  0x9b   : > { %v251_v19 = vsel %vm250_vm3, %v214_v5, 0.0 }
  0xad   : > { %v225_v11 = vpop.xlane.xlu0 %224 }
  0xae   : > { %v226_v12 = vmax.f32 %v223_v10, %v225_v11 }
  0xb0   : > { %v228_v13 = vsub.f32 %v223_v10, %v226_v12  ;;  %245 = vst.msk [vmem:[#allocation2] sm:$0xff] %vm243_vm2, %v226_v12  ;;  %234 = vperm.xlu0 %471, %v226_v12  }
  0xb2   : > { %v229_v20 = vmul.f32 1.442695, %v228_v13 }
  0xb7   : > { %v268_v31 = vld [vmem:[#allocation2] sm:$0xff] (!%p417_p6) }
 0x12f   : > { %v235_v14 = vpop.permute.xlu0 %234 }
 0x130   : > { %v237_v15 = vsub.f32 %v222_v7, %v235_v14 }
 0x132   : > { %v238_v16 = vmul.f32 1.442695, %v237_v15 }
 0x134   : > { %473 = vpow2.f32 %v238_v16 }
 0x135   : > { %475 = vpow2.f32 %v229_v20 }
 0x13e   : > { %v474_v18 = vpop.eup %473 }
 0x13f   : > { %240 = vadd.xlane.f32.xlu1 %v474_v18  ;;  %v476_v21 = vpop.eup %475 }
 0x140   : > { %v231_v23 = vmul.f32 %v476_v21, %v227_v22 }
 0x143   : > { %252 = vadd.xlane.f32.xlu1 %v251_v19 }
 0x1cc   : > { %v241_v24 = vpop.xlane.xlu1 %240 }
 0x1cd   : > { %v242_v25 = vadd.f32 %v241_v24, %v231_v23  ;;  %259 = sbr.rel (%p417_p6) target bundleno = 700 (0x2bc), region = 36 }
 0x1cf   : > { %244 = vst.msk [vmem:[#allocation3] sm:$0xff] %vm243_vm2, %v242_v25 }
 0x1d0   : > { %v253_v27 = vpop.xlane.xlu1 %252 }
 0x1d1   : > { %v254_v28 = vadd.f32 %v253_v27, %v246_v26 }
 0x1d3   : > { %255 = vst.msk [vmem:[#allocation4] sm:$0xff] %vm243_vm2, %v254_v28 }
 0x1d6   : > { %v269_v29 = vld [vmem:[#allocation3] sm:$0xff] }
 0x1d7   : > { %477 = vlog2.f32 %v269_v29 }
 0x1da   : > { %v273_v33 = vld [vmem:[#allocation4] sm:$0xff] }
 0x1e1   : > { %v478_v30 = vpop.eup %477 }
 0x1e2   : > { %v271_v32 = vmul.f32 0.6931472, %v478_v30 }
 0x1e4   : > { %v272_v34 = vadd.f32 %v271_v32, %v268_v31 }
 0x1e6   : > { %v274_v35 = vsub.f32 %v272_v34, %v273_v33 }
 0x1e8   : > { %v275_v36 = vsel %vm266_vm4, %v274_v35, 0.0 }
 0x1e9   : > { %v276_v39 = vsel %vm243_vm2, %v275_v36, 0.0 }
 0x1ea   : > { %277 = vadd.xlane.f32.xlu0 %v276_v39 }
 0x1ee   : > { %292 = vadd.xlane.f32.xlu0 %v291_v40 }
 0x277   : > { %v278_v41 = vpop.xlane.xlu0 %277 }
 0x278   : > { %v279_v42 = vrot.slane %v278_v41, 4 }
 0x27a   : > { %v280_v43 = vadd.f32 %v279_v42, %v278_v41 }
 0x27b   : > { %v293_v44 = vpop.xlane.xlu0 %292 }
 0x27c   : > { %v281_v45 = vrot.slane %v280_v43, 2  ;;  %v294_v46 = vrot.slane %v293_v44, 4 }
 0x27e   : > { %v295_v47 = vadd.f32 %v294_v46, %v293_v44  ;;  %v282_v48 = vadd.f32 %v281_v45, %v280_v43 }
 0x280   : > { %v296_v49 = vrot.slane %v295_v47, 2  ;;  %v283_v50 = vrot.slane %v282_v48, 1 }
 0x282   : > { %v297_v51 = vadd.f32 %v296_v49, %v295_v47  ;;  %v284_v52 = vadd.f32 %v283_v50, %v282_v48 }
 0x284   : > { %425 = vpush %v284_v52  ;;  %v298_v53 = vrot.slane %v297_v51, 1 }
 0x286   : > { %v299_v54 = vadd.f32 %v298_v53, %v297_v51 }
 0x288   : > { %427 = vpush %v299_v54 }
 0x2b5   : > { %s426_s25 = spop %425 }
 0x2b6   : > { %v286_v55 = vstv %s426_s25 }
 0x2b7   : > { %288 = vst.msk [vmem:[#allocation5] sm:$0x1] %vm287_vm5, %v286_v55 }
 0x2b9   : > { %s428_s26 = spop %427 }
 0x2ba   : > { %v301_v56 = vstv %s428_s26 }
 0x2bb   : > { %302 = vst.msk [vmem:[#allocation7] sm:$0x1] %vm287_vm5, %v301_v56 }
 0x2bc PF: > { %p628_p7 = scmp.eq.s32.totalorder %s409_s15, 2  ;;  %s567_s28 = smov [#allocation5]  }
 0x2bd   : > { %s312_s29 = sshll.u32 %s567_s28, 4  ;;  %s568_s30 = smov [#allocation7]   ;;  %s313_s29 = int_to_ptr.vmem [resolvable:$true] %s312_s29 }
 0x2be   : > { %s325_s4 = sshll.u32 %s568_s30, 4  ;;  %s479_s5 = scalar_lea.vmem %s313_s29, 16  ;;  %s632_s4 = int_to_ptr.vmem [resolvable:$true] %s325_s4 }
 0x2bf   : > { %p480_p8 = scmp.ne.s32.totalorder %s313_s29, %s479_s5  ;;  %s485_s6 = scalar_lea.vmem %s313_s29, 32 }
 0x2c0   : > { %p486_p11 = scmp.lt.s32.totalorder %s313_s29, %s313_s29  ;;  %p487_p12 = scmp.lt.s32.totalorder %s485_s6, %s479_s5 }
 0x2c1   : > { %p481_p9 = pnand %p480_p8, %p628_p7 }
 0x2c2   : > { %p488_p13 = por %p487_p12, %p486_p11 }
 0x2c3   : > { %p482_p10 = pneg %p481_p9 }
 0x2c5   : > { %p489_p0 = pnand %p488_p13, %p482_p10 }
 0x2c7   : > { %492 = shalt.err (!%p489_p0)
}
 0x2c8   : > { %s493_s9 = scalar_lea.hbm %s695_s2, 16 }
 0x2c9   : > { %p494_p1 = scmp.ne.s32.totalorder %s695_s2, %s493_s9  ;;  %p499_p4 = scmp.lt.u32.totalorder %s493_s9, %s695_s2 }
 0x2cb   : > { %p495_p2 = pnand %p494_p1, %p628_p7 }
 0x2cd   : > { %p496_p3 = pneg %p495_p2 }
 0x2cf   : > { %p501_p5 = pnand %p499_p4, %p496_p3 }
 0x2d1   : > { %504 = shalt.err (!%p501_p5)
}
 0x2d2   : > { %430 = dma.vmem_to_hbm [thread:$0]  (%p628_p7), %s313_s29, 16, %s695_s2, [#allocation6]  }
 0x2d3   : > { %s505_s19 = scalar_lea.vmem %s632_s4, 16  ;;  %s511_s20 = scalar_lea.vmem %s632_s4, 32 }
 0x2d4   : > { %p506_p6 = scmp.ne.s32.totalorder %s632_s4, %s505_s19  ;;  %p512_p10 = scmp.lt.s32.totalorder %s632_s4, %s632_s4 }
 0x2d5   : > { %p513_p11 = scmp.lt.s32.totalorder %s511_s20, %s505_s19 }
 0x2d6   : > { %p507_p8 = pnand %p506_p6, %p628_p7 }
 0x2d7   : > { %p514_p12 = por %p513_p11, %p512_p10 }
 0x2d8   : > { %p508_p9 = pneg %p507_p8 }
 0x2da   : > { %p515_p13 = pnand %p514_p12, %p508_p9 }
 0x2dc   : > { %518 = shalt.err (!%p515_p13)
}
 0x2dd   : > { %s519_s23 = scalar_lea.hbm %s696_s3, 16 }
 0x2de   : > { %p520_p0 = scmp.ne.s32.totalorder %s696_s3, %s519_s23  ;;  %p525_p3 = scmp.lt.u32.totalorder %s519_s23, %s696_s3 }
 0x2e0   : > { %p521_p1 = pnand %p520_p0, %p628_p7 }
 0x2e2   : > { %p522_p2 = pneg %p521_p1 }
 0x2e4   : > { %p527_p4 = pnand %p525_p3, %p522_p2 }
 0x2e6   : > { %530 = shalt.err (!%p527_p4)
}
 0x2e7   : > { %432 = dma.vmem_to_hbm [thread:$0]  (%p628_p7), %s632_s4, 16, %s696_s3, [#allocation8]  }
 0x2e8   : > { %544 = dma.done.wait (%p628_p7), [#allocation6], 16  }
 0x2e9   : > { %546 = vsyncadd (%p628_p7), [#allocation6], 4294967280 }
 0x2ea   : > { %548 = dma.done.wait (%p628_p7), [#allocation8], 16  }
 0x2eb   : > { %550 = vsyncadd (%p628_p7), [#allocation8], 4294967280 }
 0x2ec PF: > { %s16_s14 = sadd.s32 1, %s561_s14   ;;  %s698_s12 = smov %s557_s13 }
 0x2ed   : > { %p13_p5 = scmp.ge.s32.totalorder %s16_s14, 5   ;;  %s699_s13 = smov %s701_s16 }
 0x2ef   :  { %15 = sbr.rel (!%p13_p5) target bundleno = 3 (0x3), region = 76 }
 0x2f6   :  { %342 = vsyncpa [#allocation6], 1 }
 0x2f7   :  { %344 = vsyncpa [#allocation6 + $0x1], 1 }
 0x2f8   :  { %345 = vsyncpa [#allocation8], 1 }

</bundles_post_ra>
